<compile_context>
chip_gen: v5e
topology: v5e:2x2
jax: 0.10.0
libtpu: 0.0.40
codegen_flags: <defaults>
</compile_context>

<pallas_src>
import functools

import jax
import jax.numpy as jnp
from jax import lax
from jax.experimental import pallas as pl
from jax.experimental.pallas import tpu as pltpu


# ------------------------------ helpers -------------------------------------

def _round_up(x, m):
    return ((x + m - 1) // m) * m


def _pick_tiles(M, N):
    # Row tile: multiple of 8 sublanes, capped at 256 (MXU-friendly on v6e/v7x).
    tm = M if M <= 256 else 256
    tm = _round_up(tm, 8)
    # Column tile: multiple of 128 lanes (lane-dense stores), capped at 512.
    tn = N if N <= 512 else 512
    tn = _round_up(tn, 128)
    return tm, tn


def _pad2d(x, rows, cols):
    pr = rows - x.shape[0]
    pc = cols - x.shape[1]
    if pr or pc:
        x = jnp.pad(x, ((0, pr), (0, pc)))
    return x


_COMPILER_PARAMS = pltpu.CompilerParams(
    dimension_semantics=("parallel", "parallel"),
    vmem_limit_bytes=48 * 1024 * 1024,   # headroom under v7x's 64 MiB VMEM
)


# ----------------------------- Pallas kernels -------------------------------

def _linear_kernel(x1_ref, x2_ref, o_ref):
    # o = x1_tile @ x2_tile.T, contraction on the last dims so no XLU
    # transpose is materialized; f32 accumulation on the MXU.
    o_ref[...] = lax.dot_general(
        x1_ref[...], x2_ref[...],
        dimension_numbers=(((1,), (1,)), ((), ())),
        preferred_element_type=jnp.float32,
    ).astype(o_ref.dtype)


def _rbf_kernel(gamma_ref, x1_ref, x2_ref, n1_ref, n2_ref, o_ref):
    # exp(-gamma * squared-euclidean-distance); the heavy part (the cross
    # term) runs on the MXU, the exp lands on the EUP. Row norms n1/n2 are
    # precomputed in the wrapper and streamed in per tile.
    dots = lax.dot_general(
        x1_ref[...], x2_ref[...],
        dimension_numbers=(((1,), (1,)), ((), ())),
        preferred_element_type=jnp.float32,
    )                                                    # [tm, tn]
    sq = jnp.maximum(n1_ref[...] + n2_ref[...] - 2.0 * dots, 0.0)
    o_ref[...] = jnp.exp(-gamma_ref[0] * sq).astype(o_ref.dtype)


# ------------------------------ wrappers -------------------------------------

def _linear_matrix(X1, X2):
    M, D = X1.shape
    N, D2 = X2.shape
    assert D == D2, "feature dims must match"
    tm, tn = _pick_tiles(M, N)
    Mp, Np, Dp = _round_up(M, tm), _round_up(N, tn), _round_up(D, 128)
    X1p = _pad2d(X1, Mp, Dp)
    X2p = _pad2d(X2, Np, Dp)
    grid = (Mp // tm, Np // tn)
    # TODO(synk): for very large D a K grid axis with an f32 VMEM accumulator
    # would be needed to bound VMEM; typical feature dims fit as-is.
    out = pl.pallas_call(
        _linear_kernel,
        out_shape=jax.ShapeDtypeStruct((Mp, Np), X1.dtype),
        grid_spec=pltpu.PrefetchScalarGridSpec(
            num_scalar_prefetch=0,
            grid=grid,
            in_specs=[
                pl.BlockSpec((tm, Dp), lambda i, j: (i, 0)),   # X1 row tile
                pl.BlockSpec((tn, Dp), lambda i, j: (j, 0)),   # X2 row tile
            ],
            out_specs=pl.BlockSpec((tm, tn), lambda i, j: (i, j)),
        ),
        compiler_params=_COMPILER_PARAMS,
        cost_estimate=pl.CostEstimate(
            flops=2 * Mp * Np * Dp,
            transcendentals=0,
            bytes_accessed=4 * (Mp * Dp + Np * Dp + Mp * Np),
        ),
    )(X1p, X2p)
    return out[:M, :N]


def _rbf_matrix(X1, X2, gamma):
    M, D = X1.shape
    N, D2 = X2.shape
    assert D == D2, "feature dims must match"
    tm, tn = _pick_tiles(M, N)
    Mp, Np, Dp = _round_up(M, tm), _round_up(N, tn), _round_up(D, 128)
    X1p = _pad2d(X1, Mp, Dp)
    X2p = _pad2d(X2, Np, Dp)
    # Hoist row norms out of the kernel: computed once here, not per grid step.
    n1 = jnp.sum(X1p.astype(jnp.float32) ** 2, axis=-1, keepdims=True)      # [Mp, 1]
    n2 = jnp.sum(X2p.astype(jnp.float32) ** 2, axis=-1, keepdims=True).T    # [1, Np]
    gamma_arr = jnp.asarray([gamma], dtype=jnp.float32)                     # SMEM scalar
    grid = (Mp // tm, Np // tn)
    out = pl.pallas_call(
        _rbf_kernel,
        out_shape=jax.ShapeDtypeStruct((Mp, Np), X1.dtype),
        grid_spec=pltpu.PrefetchScalarGridSpec(
            num_scalar_prefetch=1,            # gamma lands in SMEM
            grid=grid,
            in_specs=[
                pl.BlockSpec((tm, Dp), lambda i, j, g: (i, 0)),   # X1 row tile
                pl.BlockSpec((tn, Dp), lambda i, j, g: (j, 0)),   # X2 row tile
                pl.BlockSpec((tm, 1), lambda i, j, g: (i, 0)),    # ||x1||^2
                pl.BlockSpec((1, tn), lambda i, j, g: (0, j)),    # ||x2||^2
            ],
            out_specs=pl.BlockSpec((tm, tn), lambda i, j, g: (i, j)),
        ),
        compiler_params=_COMPILER_PARAMS,
        cost_estimate=pl.CostEstimate(
            flops=2 * Mp * Np * Dp + 4 * Mp * Np,
            transcendentals=Mp * Np,
            bytes_accessed=4 * (Mp * Dp + Np * Dp + Mp * Np + Mp + Np),
        ),
    )(gamma_arr, X1p, X2p, n1, n2)
    return out[:M, :N]


# ----------------------------- Module wrapper --------------------------------

class KernelPallas:
    """JAX/Pallas equivalent of Kernel_pytorch (forward pass only)."""

    def __init__(self, kernel_str="linear", kernel_func=None, matrix_func=None,
                 **kernel_args):
        self.name = kernel_str
        self.args = dict(kernel_args)
        self.kernel_func = None
        if self.name == "custom":
            # TODO(synk): arbitrary user python kernel_func has no generic
            # Pallas lowering; fall back to the provided callables in JAX.
            self.kernel_func = kernel_func
            self.matrix_func = matrix_func
        elif self.name == "rbf":
            self.args.setdefault("gamma", 1.0)
            self.matrix_func = "rbf"
        elif self.name == "linear":
            self.matrix_func = "linear"
        elif self.name == "precomputed":
            self.matrix_func = "precomputed"
        else:
            raise Exception("Unknown kernel.")

    def __call__(self, X1, X2=None):
        X1 = jnp.asarray(X1)
        if not jnp.issubdtype(X1.dtype, jnp.floating):
            X1 = X1.astype(jnp.float32)
        if X2 is None:
            X2 = X1
        else:
            X2 = jnp.asarray(X2)
            if not jnp.issubdtype(X2.dtype, jnp.floating):
                X2 = X2.astype(jnp.float32)

        if self.matrix_func == "linear":
            return _linear_matrix(X1, X2)
        elif self.matrix_func == "rbf":
            return _rbf_matrix(X1, X2, float(self.args["gamma"]))
        elif self.matrix_func == "precomputed":
            # pure layout glue: K = X2.T
            return X2.T
        elif callable(self.matrix_func):
            return self.matrix_func(X1, X2, **self.args)
        elif callable(self.kernel_func):
            # custom pairwise kernel: plain-JAX vmap fallback
            f = lambda a, b: self.kernel_func(a, b, **self.args)
            return jax.vmap(lambda a: jax.vmap(lambda b: f(a, b))(X2))(X1)
        else:
            raise Exception("kernel function unspecified.")


# ------------------------------ reference ------------------------------------

def _linear_ref(X1, X2):
    return X1 @ X2.T


def _rbf_ref(X1, X2, gamma):
    sq = jnp.sum((X1[:, None, :] - X2[None, :, :]) ** 2, axis=-1)
    return jnp.exp(-gamma * sq)


# --------------------------------- main ---------------------------------------

if __name__ == "__main__":
    key = jax.random.PRNGKey(0)
    k1, k2, k3 = jax.random.split(key, 3)
    N1, N2, D = 16, 8, 32
    X1 = jax.random.normal(k1, (N1, D), dtype=jnp.float32)
    X2 = jax.random.normal(k2, (N2, D), dtype=jnp.float32)

    # linear kernel, X2 given
    lin = KernelPallas("linear")
    K_lin = jax.block_until_ready(lin(X1, X2))
    assert K_lin.shape == (N1, N2)
    assert jnp.allclose(K_lin, _linear_ref(X1, X2), atol=1e-4, rtol=1e-4)

    # linear kernel, X2 = None (X2 defaults to X1)
    K_lin_self = jax.block_until_ready(lin(X1))
    assert K_lin_self.shape == (N1, N1)
    assert jnp.allclose(K_lin_self, _linear_ref(X1, X1), atol=1e-4, rtol=1e-4)

    # rbf kernel
    rbf = KernelPallas("rbf", gamma=0.5)
    K_rbf = jax.block_until_ready(rbf(X1, X2))
    assert K_rbf.shape == (N1, N2)
    assert jnp.allclose(K_rbf, _rbf_ref(X1, X2, 0.5), atol=1e-4, rtol=1e-4)

    # non-tile-aligned shapes (exercise the padding / tail handling)
    X1b = jax.random.normal(k3, (10, 17), dtype=jnp.float32)
    X2b = jax.random.normal(k2, (5, 17), dtype=jnp.float32)
    K_lin_b = jax.block_until_ready(lin(X1b, X2b))
    assert K_lin_b.shape == (10, 5)
    assert jnp.allclose(K_lin_b, _linear_ref(X1b, X2b), atol=1e-4, rtol=1e-4)
    K_rbf_b = jax.block_until_ready(rbf(X1b, X2b))
    assert jnp.allclose(K_rbf_b, _rbf_ref(X1b, X2b, 0.5), atol=1e-4, rtol=1e-4)

    # precomputed kernel (plain transpose, glue)
    pre = KernelPallas("precomputed")
    K_pre = jax.block_until_ready(pre(X1, X2))
    assert K_pre.shape == (D, N2)
    assert jnp.allclose(K_pre, X2.T)

    print("KERNEL_OK")
</pallas_src>

<mosaic_0001>
module attributes {stable_mosaic.version = 11 : i64} {
  func.func @_linear_kernel(%arg0: i32, %arg1: i32, %arg2: memref<16x128xf32, #tpu.memory_space<vmem>>, %arg3: memref<128x128xf32, #tpu.memory_space<vmem>>, %arg4: memref<16x128xf32, #tpu.memory_space<vmem>>) attributes {dimension_semantics = [#tpu.dimension_semantics<parallel>, #tpu.dimension_semantics<parallel>], iteration_bounds = array<i64: 1, 1>, scalar_prefetch = 0 : i64, scratch_operands = 0 : i64, tpu.core_type = #tpu.core_type<tc>, window_params = [{transform_indices = @transform_0, window_bounds = array<i64: 16, 128>}, {transform_indices = @transform_1, window_bounds = array<i64: 128, 128>}, {transform_indices = @transform_2, window_bounds = array<i64: 16, 128>}]} {
    %c0 = arith.constant 0 : index
    %c0_0 = arith.constant 0 : index
    %0 = vector.load %arg2[%c0, %c0_0] : memref<16x128xf32, #tpu.memory_space<vmem>>, vector<16x128xf32>
    %c0_1 = arith.constant 0 : index
    %c0_2 = arith.constant 0 : index
    %1 = vector.load %arg3[%c0_1, %c0_2] : memref<128x128xf32, #tpu.memory_space<vmem>>, vector<128x128xf32>
    %cst = arith.constant dense<0.000000e+00> : vector<16x128xf32>
    %2 = tpu.matmul %0, %1, %cst {dimension_numbers = #tpu.dot_dimension_numbers<[1], [1], [0], [0], [0, 0, 1, 0], [], []>} : vector<16x128xf32>, vector<128x128xf32>, vector<16x128xf32> -> vector<16x128xf32>
    %c0_3 = arith.constant 0 : index
    %c0_4 = arith.constant 0 : index
    %3 = vector.load %arg4[%c0_3, %c0_4] : memref<16x128xf32, #tpu.memory_space<vmem>>, vector<16x128xf32>
    tpu.vector_store %arg4[%c0_3, %c0_4], %2 {strides = array<i32>} : memref<16x128xf32, #tpu.memory_space<vmem>>, vector<16x128xf32>,
    return
  }
  func.func @transform_0(%arg0: i32, %arg1: i32) -> (i32, i32) {
    %c0_i32 = arith.constant 0 : i32
    %c0_i32_0 = arith.constant 0 : i32
    return %arg0, %c0_i32 : i32, i32
  }
  func.func @transform_1(%arg0: i32, %arg1: i32) -> (i32, i32) {
    %c0_i32 = arith.constant 0 : i32
    %c0_i32_0 = arith.constant 0 : i32
    return %arg1, %c0_i32 : i32, i32
  }
  func.func @transform_2(%arg0: i32, %arg1: i32) -> (i32, i32) {
    %c0_i32 = arith.constant 0 : i32
    return %arg0, %arg1 : i32, i32
  }
}

</mosaic_0001>

<bundles_post_ra>
// kernel: tpu_custom_call.1
= control target key start
LH: loop header
LB: loop body
LE: loop exit
PB: predicated region body
PF: predicated region fallthrough
CT: control target
= control target key end

     0   :  { %7 = vsyncpa [#allocation3], 0  ;;  %s244_s0 = inlined_call_operand.hbm [shape: f32[16,128], index: 0, kind: input, shape index: {}]   ;;  %s245_s1 = inlined_call_operand.hbm [shape: f32[128,128], index: 1, kind: input, shape index: {}]   ;;  %s246_s2 = inlined_call_operand.hbm [shape: f32[16,128], index: 2, kind: output, shape index: {}]  }
   0x1   :  { %8 = vsyncpa [#allocation6], 0 }
   0x2   :  { %9 = vsyncpa [#allocation4], 0  ;;  %s14_s11 = sshll.u32 %s244_s0, 4  ;;  %s206_s12 = smov [#allocation2]   ;;  %s15_s11 = int_to_ptr.hbm [resolvable:$true] %s14_s11 }
   0x3   :  { %s16_s13 = sshll.u32 %s206_s12, 4  ;;  %s27_s16 = sshll.u32 %s245_s1, 4  ;;  %s17_s13 = int_to_ptr.vmem [resolvable:$true] %s16_s13  ;;  %s28_s16 = int_to_ptr.hbm [resolvable:$true] %s27_s16 }
   0x4   :  { %s207_s17 = smov 128   ;;  %s208_s18 = smov 8  }
   0x5   :  { %22 = dma.hbm_to_vmem [thread:$0]  %s15_s11, 256, %s17_s13, [#allocation3], %s207_s17, %s207_s17, %s208_s18  }
   0x6   :  { %s209_s19 = smov [#allocation5]  }
   0x7   :  { %s29_s20 = sshll.u32 %s209_s19, 4  ;;  %s30_s20 = int_to_ptr.vmem [resolvable:$true] %s29_s20 }
   0x8   :  { %35 = dma.hbm_to_vmem [thread:$0]  %s28_s16, 2048, %s30_s20, [#allocation6], %s207_s17, %s207_s17, %s208_s18  }
   0x9   :  { %200 = dma.done.wait [#allocation3], 256  }
   0xa   :  { %201 = vsyncadd [#allocation3], 4294967040 }
   0xb   :  { %202 = dma.done.wait [#allocation6], 2048  }
   0xc   :  { %203 = vsyncadd [#allocation6], 4294965248  ;;  %v61_v0 = vld [vmem:[#allocation5 + $0x78] sm:$0xff]  ;;  %v60_v1 = vld [vmem:[#allocation5 + $0x70] sm:$0xff]  ;;  %s210_s0 = smov [#allocation7]   ;;  %s93_s23 = sshll.u32 %s246_s2, 4  ;;  %s94_s23 = int_to_ptr.hbm [resolvable:$true] %s93_s23 }
   0xd   :  { %62 = vmatpush.xpose.msra.mxu0 %v61_v0  ;;  %107 = vmatpush.xpose.msra.mxu1 %v61_v0  ;;  %v59_v2 = vld [vmem:[#allocation5 + $0x68] sm:$0xff]  ;;  %v58_v3 = vld [vmem:[#allocation5 + $0x60] sm:$0xff]  ;;  %v57_v4 = vld [vmem:[#allocation5 + $0x58] sm:$0xff]  ;;  %s91_s1 = sshll.u32 %s210_s0, 4  ;;  %s92_s1 = int_to_ptr.vmem [resolvable:$true] %s91_s1 }
   0xe   :  { %v56_v5 = vld [vmem:[#allocation5 + $0x50] sm:$0xff]  ;;  %v55_v6 = vld [vmem:[#allocation5 + $0x48] sm:$0xff]  ;;  %v54_v7 = vld [vmem:[#allocation5 + $0x40] sm:$0xff] }
   0xf   :  { %v53_v8 = vld [vmem:[#allocation5 + $0x38] sm:$0xff]  ;;  %v52_v9 = vld [vmem:[#allocation5 + $0x30] sm:$0xff]  ;;  %v51_v10 = vld [vmem:[#allocation5 + $0x28] sm:$0xff] }
  0x10   :  { %v50_v11 = vld [vmem:[#allocation5 + $0x20] sm:$0xff]  ;;  %v49_v12 = vld [vmem:[#allocation5 + $0x18] sm:$0xff]  ;;  %v48_v13 = vld [vmem:[#allocation5 + $0x10] sm:$0xff] }
  0x11   :  { %63 = vmatpush.xpose.msra.mxu0 %v60_v1  ;;  %108 = vmatpush.xpose.msra.mxu1 %v60_v1  ;;  %v47_v14 = vld [vmem:[#allocation5 + $0x8] sm:$0xff]  ;;  %v46_v15 = vld [vmem:[#allocation5] sm:$0xff]  ;;  %v44_v16 = vld [vmem:[#allocation2] sm:$0xff] }
  0x12   :  { %v45_v17 = vld [vmem:[#allocation2 + $0x8] sm:$0xff] }
  0x15   :  { %64 = vmatpush.xpose.msra.mxu0 %v59_v2  ;;  %109 = vmatpush.xpose.msra.mxu1 %v59_v2 }
  0x19   :  { %65 = vmatpush.xpose.msra.mxu0 %v58_v3  ;;  %110 = vmatpush.xpose.msra.mxu1 %v58_v3 }
  0x1d   :  { %66 = vmatpush.xpose.msra.mxu0 %v57_v4  ;;  %111 = vmatpush.xpose.msra.mxu1 %v57_v4 }
  0x21   :  { %67 = vmatpush.xpose.msra.mxu0 %v56_v5  ;;  %112 = vmatpush.xpose.msra.mxu1 %v56_v5 }
  0x25   :  { %68 = vmatpush.xpose.msra.mxu0 %v55_v6  ;;  %113 = vmatpush.xpose.msra.mxu1 %v55_v6 }
  0x29   :  { %69 = vmatpush.xpose.msra.mxu0 %v54_v7  ;;  %114 = vmatpush.xpose.msra.mxu1 %v54_v7 }
  0x2d   :  { %70 = vmatpush.xpose.msra.mxu0 %v53_v8  ;;  %115 = vmatpush.xpose.msra.mxu1 %v53_v8 }
  0x31   :  { %71 = vmatpush.xpose.msra.mxu0 %v52_v9  ;;  %116 = vmatpush.xpose.msra.mxu1 %v52_v9 }
  0x35   :  { %72 = vmatpush.xpose.msra.mxu0 %v51_v10  ;;  %117 = vmatpush.xpose.msra.mxu1 %v51_v10 }
  0x39   :  { %73 = vmatpush.xpose.msra.mxu0 %v50_v11  ;;  %118 = vmatpush.xpose.msra.mxu1 %v50_v11 }
  0x3d   :  { %74 = vmatpush.xpose.msra.mxu0 %v49_v12  ;;  %119 = vmatpush.xpose.msra.mxu1 %v49_v12 }
  0x41   :  { %75 = vmatpush.xpose.msra.mxu0 %v48_v13  ;;  %120 = vmatpush.xpose.msra.mxu1 %v48_v13 }
  0x45   :  { %76 = vmatpush.xpose.msra.mxu0 %v47_v14  ;;  %121 = vmatpush.xpose.msra.mxu1 %v47_v14 }
  0x49   :  { %77 = vmatpush.xpose.msra.mxu0 %v46_v15  ;;  %122 = vmatpush.xpose.msra.mxu1 %v46_v15 }
  0x4c   :  { %78 = vmatmul.f32.vlgmr.msra.gmra.mxu0 %v44_v16  ;;  %81 = vmatmul.f32.vlgmr.msra.gmra.mxu1 %v45_v17 }
  0xc9   :  { %v79_v18 = vpop.f32.mrf.mxu0  ;;  %v82_v19 = vpop.f32.mrf.mxu1 }
  0xca   :  { %85 = vst [vmem:[#allocation7] sm:$0xff] %v79_v18 }
  0xcb   :  { %86 = vst [vmem:[#allocation7 + $0x8] sm:$0xff] %v82_v19 }
  0xcc   :  { %99 = dma.vmem_to_hbm [thread:$0]  %s92_s1, 256, %s94_s23, [#allocation4], %s207_s17, %s207_s17, %s208_s18  }
  0xcd   :  { %204 = dma.done.wait [#allocation4], 256  }
  0xce   :  { %205 = vsyncadd [#allocation4], 4294967040 }
  0xcf   :  { %104 = vsyncpa [#allocation3], 1 }
  0xd0   :  { %105 = vsyncpa [#allocation6], 1 }
  0xd1   :  { %106 = vsyncpa [#allocation4], 1 }

</bundles_post_ra>
